<compile_context>
chip_gen: v6e
topology: v6e:2x2x1
jax: 0.10.0
libtpu: 0.0.40
codegen_flags: <defaults>
</compile_context>

<pallas_src>
import functools

import jax
import jax.numpy as jnp
from jax.experimental import pallas as pl
from jax.experimental.pallas import tpu as pltpu

BN_EPS = 1e-5
LEAKY_SLOPE = 0.2


def _leaky_relu(x):
    # max(x, a*x) == LeakyReLU(a) for 0 < a < 1  (mul + max, no cmp/select).
    return jnp.maximum(x, LEAKY_SLOPE * x)


def _round_up(n, m):
    return ((n + m - 1) // m) * m


# ---------------------------------------------------------------------------
# Kernel 1 (fused path): one batch tile, full (padded) feature width,
# all weights resident in VMEM.  Args: x, w1, b1, w2', b2'  ->  out
# (BN1 and BN2 are already folded into w2'/b2' by the wrapper.)
# ---------------------------------------------------------------------------
def residual_block_kernel(x_ref, w1_ref, b1_ref, w2_ref, b2_ref, o_ref):
    x = x_ref[...]                                      # (TB, IN_P)
    # Linear(in -> hidden) on the MXU, f32 accumulation, then LeakyReLU(0.2).
    h = jnp.dot(x, w1_ref[...], preferred_element_type=jnp.float32) + b1_ref[...]
    h = _leaky_relu(h)
    # BatchNorm1d(hidden) + BatchNorm1d(in) are folded into w2/b2 (wrapper).
    # Dropout(0.2): identity in inference mode.
    # TODO(synk): training-mode dropout (random mask) not implemented.
    o = jnp.dot(h.astype(w2_ref.dtype), w2_ref[...],
                preferred_element_type=jnp.float32) + b2_ref[...]
    # residual add + LeakyReLU(0.2) in f32, write in the caller's dtype.
    out = _leaky_relu(x.astype(jnp.float32) + o)
    o_ref[...] = out.astype(o_ref.dtype)


# ---------------------------------------------------------------------------
# Kernel 2 (K-tiled fallback): hidden dim split over a reduction grid axis,
# f32 accumulator scratch; used when the full weights do not fit VMEM.
# ---------------------------------------------------------------------------
def residual_block_ktiled_kernel(x_ref, w1_ref, b1_ref, w2_ref, b2_ref,
                                 o_ref, acc_ref):
    k = pl.program_id(1)

    @pl.when(k == 0)
    def _():
        acc_ref[...] = jnp.zeros_like(acc_ref)

    # Hidden slab: Linear1 slab + LeakyReLU (elementwise -> safe to slab).
    h = jnp.dot(x_ref[...], w1_ref[...],
                preferred_element_type=jnp.float32) + b1_ref[...]
    h = _leaky_relu(h)
    acc_ref[...] += jnp.dot(h.astype(w2_ref.dtype), w2_ref[...],
                            preferred_element_type=jnp.float32)

    @pl.when(k == pl.num_programs(1) - 1)
    def _():
        out = _leaky_relu(x_ref[...].astype(jnp.float32) + acc_ref[...] + b2_ref[...])
        o_ref[...] = out.astype(o_ref.dtype)


# ---------------------------------------------------------------------------
# Tiling helpers
# ---------------------------------------------------------------------------
def _vmem_budget_bytes():
    """Generation-aware usable-VMEM budget (clamped below physical capacity)."""
    try:
        cap = int(pltpu.get_tpu_info().vmem_capacity_bytes)
    except Exception:
        cap = 64 << 20          # conservative default (v7x-sized)
    return (cap * 13) // 16     # leave headroom for compiler scratch


def _pick_batch_tile(batch, per_row_bytes, fixed_bytes, budget, min_tile=8):
    """Largest batch tile whose footprint fits the budget; >=4 grid steps when possible."""
    bt = min_tile
    for cand in (2048, 1024, 512, 256, 128, 64, 32, 16, 8):
        if cand < min_tile:
            break
        if fixed_bytes + cand * per_row_bytes <= budget:
            bt = cand
            break
    bt = min(bt, _round_up(batch, min_tile))
    if batch > min_tile:
        # Target >= 4 grid steps (keeps both v7x TensorCores pipelined).
        bt = min(bt, max(min_tile, _round_up(pl.cdiv(batch, 4), min_tile)))
    return max(min_tile, bt)


def _pick_hidden_tile(hid_p, in_p, itemsize, budget):
    for cand in (2048, 1024, 512, 256, 128):
        if hid_p % cand == 0 and 2 * 2 * in_p * cand * itemsize <= budget // 2:
            return cand
    return 128


# ---------------------------------------------------------------------------
# Wrapper: BN folding, conditional 128-lane padding, tiling, pallas_call.
# ---------------------------------------------------------------------------
def residual_block(x, params, *, batch_tile=None, hidden_tile=None,
                   use_bf16_matmul=False, buffer_weights=True):
    """x: (B, in_features). params: dict of weights (see init_params)."""
    B, IN = x.shape
    HID = params["w1"].shape[1]
    IN_P = _round_up(IN, 128)
    HID_P = _round_up(HID, 128)

    out_dtype = x.dtype
    mm_dtype = jnp.bfloat16 if use_bf16_matmul else jnp.float32
    itemsize = jnp.dtype(mm_dtype).itemsize
    out_itemsize = jnp.dtype(out_dtype).itemsize
    min_itemsize = min(itemsize, out_itemsize)
    min_tile = 8 if min_itemsize >= 4 else (16 if min_itemsize == 2 else 32)

    # --- fold both BatchNorms (f32) -------------------------------------------
    s1 = params["gamma1"] * jax.lax.rsqrt(params["var1"] + BN_EPS)       # (1, HID)
    t1 = params["beta1"] - params["mean1"] * s1                          # (1, HID)
    s2 = params["gamma2"] * jax.lax.rsqrt(params["var2"] + BN_EPS)       # (1, IN)
    w2_f = params["w2"] * s2                                             # BN2 -> cols
    b2_f = (params["b2"] - params["mean2"]) * s2 + params["beta2"]       # (1, IN)
    # BN1 sits between LeakyReLU and Linear2 (both affine) -> fold it forward.
    w2_ff = s1.T * w2_f                                                  # BN1 -> rows
    b2_ff = b2_f + t1 @ w2_f                                             # (1, IN)

    def pad2(a, r, c):
        if a.shape == (r, c):
            return a
        return jnp.pad(a, ((0, r - a.shape[0]), (0, c - a.shape[1])))

    # Cast first, then pad (avoids materializing an extra f32 padded copy).
    w1_p = pad2(params["w1"].astype(mm_dtype), IN_P, HID_P)
    b1_p = pad2(params["b1"].astype(jnp.float32), 1, HID_P)
    w2_p = pad2(w2_ff.astype(mm_dtype), HID_P, IN_P)
    b2_p = pad2(b2_ff.astype(jnp.float32), 1, IN_P)

    usable = _vmem_budget_bytes()
    wcopies = 1 if buffer_weights else 2
    fused_weight_bytes = wcopies * (2 * IN_P * HID_P * itemsize + (HID_P + IN_P) * 4)
    force_ktiled = hidden_tile is not None and hidden_tile < HID_P
    use_fused = (not force_ktiled) and fused_weight_bytes <= (usable * 3) // 5

    if use_fused:
        # ---------------- fused path (weights fully resident) -----------------
        per_row = (2 * IN_P * itemsize + 2 * IN_P * out_itemsize
                   + HID_P * 4 + 2 * IN_P * 4)
        bt = batch_tile if batch_tile is not None else _pick_batch_tile(
            B, per_row, fused_weight_bytes, usable, min_tile)
        B_P = _round_up(B, bt)
        x_in = pad2(x.astype(mm_dtype), B_P, IN_P)

        def wspec(shape):
            # Grid-invariant operands: single buffer (no pointless double-buffering).
            if buffer_weights:
                return pl.BlockSpec(shape, lambda i: (0, 0),
                                    pipeline_mode=pl.Buffered(1))
            return pl.BlockSpec(shape, lambda i: (0, 0))

        in_specs = [
            pl.BlockSpec((bt, IN_P), lambda i: (i, 0)),   # x
            wspec((IN_P, HID_P)),                         # w1 (in x hidden)
            wspec((1, HID_P)),                            # b1
            wspec((HID_P, IN_P)),                         # w2 (BN1+BN2 folded)
            wspec((1, IN_P)),                             # b2 (BN1+BN2 folded)
        ]
        out_specs = pl.BlockSpec((bt, IN_P), lambda i: (i, 0))
        grid = (B_P // bt,)

        est = fused_weight_bytes + bt * per_row
        vmem_limit = int(min(usable, max(32 << 20, 2 * est)))

        out_p = pl.pallas_call(
            residual_block_kernel,
            out_shape=jax.ShapeDtypeStruct((B_P, IN_P), out_dtype),
            grid_spec=pltpu.PrefetchScalarGridSpec(
                num_scalar_prefetch=0, grid=grid,
                in_specs=in_specs, out_specs=out_specs),
            compiler_params=pltpu.CompilerParams(
                dimension_semantics=("parallel",),
                vmem_limit_bytes=vmem_limit),
        )(x_in, w1_p, b1_p, w2_p, b2_p)
    else:
        # ---------------- K-tiled fallback (hidden dim too large) -------------
        if hidden_tile is not None and HID_P % hidden_tile == 0:
            ht = hidden_tile
        else:
            ht = _pick_hidden_tile(HID_P, IN_P, itemsize, usable)
        slab_bytes = 2 * (2 * IN_P * ht * itemsize + ht * 4) + IN_P * 4
        per_row = (2 * IN_P * itemsize + 2 * IN_P * out_itemsize
                   + IN_P * 4              # acc scratch
                   + ht * 4 + IN_P * 4)    # h + partial product
        bt = batch_tile if batch_tile is not None else _pick_batch_tile(
            B, per_row, slab_bytes, usable, min_tile)
        B_P = _round_up(B, bt)
        x_in = pad2(x.astype(mm_dtype), B_P, IN_P)
        nk = HID_P // ht

        if buffer_weights:
            b2_spec = pl.BlockSpec((1, IN_P), lambda i, k: (0, 0),
                                   pipeline_mode=pl.Buffered(1))
        else:
            b2_spec = pl.BlockSpec((1, IN_P), lambda i, k: (0, 0))

        in_specs = [
            pl.BlockSpec((bt, IN_P), lambda i, k: (i, 0)),   # x (reused over k)
            pl.BlockSpec((IN_P, ht), lambda i, k: (0, k)),   # w1 slab
            pl.BlockSpec((1, ht),    lambda i, k: (0, k)),   # b1 slab
            pl.BlockSpec((ht, IN_P), lambda i, k: (k, 0)),   # w2 slab (folded)
            b2_spec,                                         # b2 (folded)
        ]
        out_specs = pl.BlockSpec((bt, IN_P), lambda i, k: (i, 0))
        grid = (B_P // bt, nk)

        est = slab_bytes + bt * per_row
        vmem_limit = int(min(usable, max(32 << 20, 2 * est)))

        out_p = pl.pallas_call(
            residual_block_ktiled_kernel,
            out_shape=jax.ShapeDtypeStruct((B_P, IN_P), out_dtype),
            grid_spec=pltpu.PrefetchScalarGridSpec(
                num_scalar_prefetch=0, grid=grid,
                in_specs=in_specs, out_specs=out_specs,
                scratch_shapes=[pltpu.VMEM((bt, IN_P), jnp.float32)]),
            compiler_params=pltpu.CompilerParams(
                dimension_semantics=("parallel", "arbitrary"),
                vmem_limit_bytes=vmem_limit),
        )(x_in, w1_p, b1_p, w2_p, b2_p)

    if out_p.shape[0] != B or out_p.shape[1] != IN:
        out_p = out_p[:B, :IN]
    return out_p


# ---------------------------------------------------------------------------
# Parameter construction + pure-JAX reference
# ---------------------------------------------------------------------------
def init_params(key, in_features, hidden_features):
    """Deterministic synthetic parameters matching nn.Linear / nn.BatchNorm1d shapes."""
    ks = jax.random.split(key, 12)
    lim1 = 1.0 / jnp.sqrt(in_features)
    lim2 = 1.0 / jnp.sqrt(hidden_features)
    return {
        # nn.Linear stores (out, in); kept pre-transposed as (in, out) here.
        "w1": jax.random.uniform(ks[0], (in_features, hidden_features),
                                 jnp.float32, -lim1, lim1),
        "b1": jax.random.uniform(ks[1], (1, hidden_features), jnp.float32, -lim1, lim1),
        "w2": jax.random.uniform(ks[2], (hidden_features, in_features),
                                 jnp.float32, -lim2, lim2),
        "b2": jax.random.uniform(ks[3], (1, in_features), jnp.float32, -lim2, lim2),
        "gamma1": 1.0 + 0.1 * jax.random.normal(ks[4], (1, hidden_features), jnp.float32),
        "beta1":  0.1 * jax.random.normal(ks[5], (1, hidden_features), jnp.float32),
        "mean1":  0.05 * jax.random.normal(ks[6], (1, hidden_features), jnp.float32),
        "var1":   1.0 + 0.1 * jnp.abs(jax.random.normal(ks[7], (1, hidden_features),
                                                        jnp.float32)),
        "gamma2": 1.0 + 0.1 * jax.random.normal(ks[8], (1, in_features), jnp.float32),
        "beta2":  0.1 * jax.random.normal(ks[9], (1, in_features), jnp.float32),
        "mean2":  0.05 * jax.random.normal(ks[10], (1, in_features), jnp.float32),
        "var2":   1.0 + 0.1 * jnp.abs(jax.random.normal(ks[11], (1, in_features),
                                                        jnp.float32)),
    }


def residual_block_ref(x, p):
    """Pure-JAX reference of the same forward pass (eval-mode BN/Dropout)."""
    h = x @ p["w1"] + p["b1"]
    h = jnp.where(h >= 0, h, LEAKY_SLOPE * h)
    h = (h - p["mean1"]) * (p["gamma1"] / jnp.sqrt(p["var1"] + BN_EPS)) + p["beta1"]
    o = h @ p["w2"] + p["b2"]
    o = (o - p["mean2"]) * (p["gamma2"] / jnp.sqrt(p["var2"] + BN_EPS)) + p["beta2"]
    out = x + o
    return jnp.where(out >= 0, out, LEAKY_SLOPE * out)


# ---------------------------------------------------------------------------
# Test harness
# ---------------------------------------------------------------------------
def _call(x, params, **kw):
    fn = jax.jit(functools.partial(residual_block, **kw))
    return jax.block_until_ready(fn(x, params))


def _call_robust(x, params, **kw):
    # Prefer single-buffered (Buffered(1)) grid-invariant weights; fall back to
    # default double-buffering if the installed JAX rejects pipeline_mode here.
    try:
        return _call(x, params, buffer_weights=True, **kw)
    except Exception:
        return _call(x, params, buffer_weights=False, **kw)


if __name__ == "__main__":
    IN_FEATURES = 32
    HIDDEN_FEATURES = 64
    BATCH = 16

    key = jax.random.PRNGKey(0)
    kx, kp = jax.random.split(key)
    x = jax.random.normal(kx, (BATCH, IN_FEATURES), jnp.float32)
    params = init_params(kp, IN_FEATURES, HIDDEN_FEATURES)
    ref = residual_block_ref(x, params)

    # Fused f32 path.
    out = _call_robust(x, params)
    assert out.shape == (BATCH, IN_FEATURES)
    assert jnp.allclose(out, ref, atol=1e-4, rtol=1e-4), (
        float(jnp.max(jnp.abs(out - ref))))

    # bf16-matmul path (inputs/weights rounded to bf16 -> looser tolerance).
    out_bf16 = _call_robust(x, params, use_bf16_matmul=True)
    assert jnp.allclose(out_bf16, ref, atol=5e-2, rtol=5e-2), (
        float(jnp.max(jnp.abs(out_bf16 - ref))))

    # K-tiled fallback path (hidden dim split over a reduction grid axis).
    x2 = jax.random.normal(jax.random.PRNGKey(1), (24, 48), jnp.float32)
    params2 = init_params(jax.random.PRNGKey(2), 48, 200)
    ref2 = residual_block_ref(x2, params2)
    out2 = _call_robust(x2, params2, hidden_tile=128)
    assert out2.shape == (24, 48)
    assert jnp.allclose(out2, ref2, atol=1e-4, rtol=1e-4), (
        float(jnp.max(jnp.abs(out2 - ref2))))

    print("KERNEL_OK")
</pallas_src>

<mosaic_0001>
module attributes {stable_mosaic.version = 11 : i64} {
  func.func @residual_block_kernel(%arg0: i32, %arg1: memref<8x128xf32, #tpu.memory_space<vmem>>, %arg2: memref<128x128xf32, #tpu.memory_space<vmem>>, %arg3: memref<1x128xf32, #tpu.memory_space<vmem>>, %arg4: memref<128x128xf32, #tpu.memory_space<vmem>>, %arg5: memref<1x128xf32, #tpu.memory_space<vmem>>, %arg6: memref<8x128xf32, #tpu.memory_space<vmem>>) attributes {dimension_semantics = [#tpu.dimension_semantics<parallel>], iteration_bounds = array<i64: 2>, scalar_prefetch = 0 : i64, scratch_operands = 0 : i64, tpu.core_type = #tpu.core_type<tc>, window_params = [{transform_indices = @transform_0, window_bounds = array<i64: 8, 128>}, {pipeline_mode = #tpu.pipeline_mode<synchronous>, transform_indices = @transform_1, window_bounds = array<i64: 128, 128>}, {pipeline_mode = #tpu.pipeline_mode<synchronous>, transform_indices = @transform_2, window_bounds = array<i64: 1, 128>}, {pipeline_mode = #tpu.pipeline_mode<synchronous>, transform_indices = @transform_3, window_bounds = array<i64: 128, 128>}, {pipeline_mode = #tpu.pipeline_mode<synchronous>, transform_indices = @transform_4, window_bounds = array<i64: 1, 128>}, {transform_indices = @transform_5, window_bounds = array<i64: 8, 128>}]} {
    %c0 = arith.constant 0 : index
    %c0_0 = arith.constant 0 : index
    %0 = vector.load %arg1[%c0, %c0_0] : memref<8x128xf32, #tpu.memory_space<vmem>>, vector<8x128xf32>
    %c0_1 = arith.constant 0 : index
    %c0_2 = arith.constant 0 : index
    %1 = vector.load %arg2[%c0_1, %c0_2] : memref<128x128xf32, #tpu.memory_space<vmem>>, vector<128x128xf32>
    %cst = arith.constant dense<0.000000e+00> : vector<8x128xf32>
    %2 = tpu.matmul %0, %1, %cst {dimension_numbers = #tpu.dot_dimension_numbers<[1], [0], [0], [1], [0, 0, 1, 1], [], []>} : vector<8x128xf32>, vector<128x128xf32>, vector<8x128xf32> -> vector<8x128xf32>
    %c0_3 = arith.constant 0 : index
    %c0_4 = arith.constant 0 : index
    %3 = vector.load %arg3[%c0_3, %c0_4] : memref<1x128xf32, #tpu.memory_space<vmem>>, vector<1x128xf32>
    %4 = vector.broadcast %3 : vector<1x128xf32> to vector<8x128xf32>
    %5 = arith.addf %2, %4 : vector<8x128xf32>
    %cst_5 = arith.constant 2.000000e-01 : f32
    %6 = vector.broadcast %cst_5 : f32 to vector<8x128xf32>
    %7 = arith.mulf %6, %5 : vector<8x128xf32>
    %8 = arith.maximumf %5, %7 : vector<8x128xf32>
    %c0_6 = arith.constant 0 : index
    %c0_7 = arith.constant 0 : index
    %9 = vector.load %arg4[%c0_6, %c0_7] : memref<128x128xf32, #tpu.memory_space<vmem>>, vector<128x128xf32>
    %cst_8 = arith.constant dense<0.000000e+00> : vector<8x128xf32>
    %10 = tpu.matmul %8, %9, %cst_8 {dimension_numbers = #tpu.dot_dimension_numbers<[1], [0], [0], [1], [0, 0, 1, 1], [], []>} : vector<8x128xf32>, vector<128x128xf32>, vector<8x128xf32> -> vector<8x128xf32>
    %c0_9 = arith.constant 0 : index
    %c0_10 = arith.constant 0 : index
    %11 = vector.load %arg5[%c0_9, %c0_10] : memref<1x128xf32, #tpu.memory_space<vmem>>, vector<1x128xf32>
    %12 = vector.broadcast %11 : vector<1x128xf32> to vector<8x128xf32>
    %13 = arith.addf %10, %12 : vector<8x128xf32>
    %14 = arith.addf %0, %13 : vector<8x128xf32>
    %cst_11 = arith.constant 2.000000e-01 : f32
    %15 = vector.broadcast %cst_11 : f32 to vector<8x128xf32>
    %16 = arith.mulf %15, %14 : vector<8x128xf32>
    %17 = arith.maximumf %14, %16 : vector<8x128xf32>
    %c0_12 = arith.constant 0 : index
    %c0_13 = arith.constant 0 : index
    %18 = vector.load %arg6[%c0_12, %c0_13] : memref<8x128xf32, #tpu.memory_space<vmem>>, vector<8x128xf32>
    tpu.vector_store %arg6[%c0_12, %c0_13], %17 {strides = array<i32>} : memref<8x128xf32, #tpu.memory_space<vmem>>, vector<8x128xf32>,
    return
  }
  func.func @transform_0(%arg0: i32) -> (i32, i32) {
    %c0_i32 = arith.constant 0 : i32
    %c0_i32_0 = arith.constant 0 : i32
    return %arg0, %c0_i32 : i32, i32
  }
  func.func @transform_1(%arg0: i32) -> (i32, i32) {
    %c0_i32 = arith.constant 0 : i32
    %c0_i32_0 = arith.constant 0 : i32
    %c0_i32_1 = arith.constant 0 : i32
    return %c0_i32, %c0_i32_0 : i32, i32
  }
  func.func @transform_2(%arg0: i32) -> (i32, i32) {
    %c0_i32 = arith.constant 0 : i32
    %c0_i32_0 = arith.constant 0 : i32
    %c0_i32_1 = arith.constant 0 : i32
    return %c0_i32, %c0_i32_0 : i32, i32
  }
  func.func @transform_3(%arg0: i32) -> (i32, i32) {
    %c0_i32 = arith.constant 0 : i32
    %c0_i32_0 = arith.constant 0 : i32
    %c0_i32_1 = arith.constant 0 : i32
    return %c0_i32, %c0_i32_0 : i32, i32
  }
  func.func @transform_4(%arg0: i32) -> (i32, i32) {
    %c0_i32 = arith.constant 0 : i32
    %c0_i32_0 = arith.constant 0 : i32
    %c0_i32_1 = arith.constant 0 : i32
    return %c0_i32, %c0_i32_0 : i32, i32
  }
  func.func @transform_5(%arg0: i32) -> (i32, i32) {
    %c0_i32 = arith.constant 0 : i32
    %c0_i32_0 = arith.constant 0 : i32
    return %arg0, %c0_i32 : i32, i32
  }
}

module attributes {stable_mosaic.version = 11 : i64} {
  func.func @residual_block_kernel(%arg0: i32, %arg1: memref<8x128xf32, #tpu.memory_space<vmem>>, %arg2: memref<128x128xf32, #tpu.memory_space<vmem>>, %arg3: memref<1x128xf32, #tpu.memory_space<vmem>>, %arg4: memref<128x128xf32, #tpu.memory_space<vmem>>, %arg5: memref<1x128xf32, #tpu.memory_space<vmem>>, %arg6: memref<8x128xf32, #tpu.memory_space<vmem>>) attributes {dimension_semantics = [#tpu.dimension_semantics<parallel>], iteration_bounds = array<i64: 2>, scalar_prefetch = 0 : i64, scratch_operands = 0 : i64, tpu.core_type = #tpu.core_type<tc>, window_params = [{transform_indices = @transform_0, window_bounds = array<i64: 8, 128>}, {pipeline_mode = #tpu.pipeline_mode<synchronous>, transform_indices = @transform_1, window_bounds = array<i64: 128, 128>}, {pipeline_mode = #tpu.pipeline_mode<synchronous>, transform_indices = @transform_2, window_bounds = array<i64: 1, 128>}, {pipeline_mode = #tpu.pipeline_mode<synchronous>, transform_indices = @transform_3, window_bounds = array<i64: 128, 128>}, {pipeline_mode = #tpu.pipeline_mode<synchronous>, transform_indices = @transform_4, window_bounds = array<i64: 1, 128>}, {transform_indices = @transform_5, window_bounds = array<i64: 8, 128>}]} {
    %c0 = arith.constant 0 : index
    %c0_0 = arith.constant 0 : index
    %0 = vector.load %arg1[%c0, %c0_0] : memref<8x128xf32, #tpu.memory_space<vmem>>, vector<8x128xf32>
    %c0_1 = arith.constant 0 : index
    %c0_2 = arith.constant 0 : index
    %1 = vector.load %arg2[%c0_1, %c0_2] : memref<128x128xf32, #tpu.memory_space<vmem>>, vector<128x128xf32>
    %cst = arith.constant dense<0.000000e+00> : vector<8x128xf32>
    %2 = tpu.matmul %0, %1, %cst {dimension_numbers = #tpu.dot_dimension_numbers<[1], [0], [0], [1], [0, 0, 1, 1], [], []>} : vector<8x128xf32>, vector<128x128xf32>, vector<8x128xf32> -> vector<8x128xf32>
    %c0_3 = arith.constant 0 : index
    %c0_4 = arith.constant 0 : index
    %3 = vector.load %arg3[%c0_3, %c0_4] : memref<1x128xf32, #tpu.memory_space<vmem>>, vector<1x128xf32>
    %4 = vector.broadcast %3 : vector<1x128xf32> to vector<8x128xf32>
    %5 = arith.addf %2, %4 : vector<8x128xf32>
    %cst_5 = arith.constant 2.000000e-01 : f32
    %6 = vector.broadcast %cst_5 : f32 to vector<8x128xf32>
    %7 = arith.mulf %6, %5 : vector<8x128xf32>
    %8 = arith.maximumf %5, %7 : vector<8x128xf32>
    %c0_6 = arith.constant 0 : index
    %c0_7 = arith.constant 0 : index
    %9 = vector.load %arg4[%c0_6, %c0_7] : memref<128x128xf32, #tpu.memory_space<vmem>>, vector<128x128xf32>
    %cst_8 = arith.constant dense<0.000000e+00> : vector<8x128xf32>
    %10 = tpu.matmul %8, %9, %cst_8 {dimension_numbers = #tpu.dot_dimension_numbers<[1], [0], [0], [1], [0, 0, 1, 1], [], []>} : vector<8x128xf32>, vector<128x128xf32>, vector<8x128xf32> -> vector<8x128xf32>
    %c0_9 = arith.constant 0 : index
    %c0_10 = arith.constant 0 : index
    %11 = vector.load %arg5[%c0_9, %c0_10] : memref<1x128xf32, #tpu.memory_space<vmem>>, vector<1x128xf32>
    %12 = vector.broadcast %11 : vector<1x128xf32> to vector<8x128xf32>
    %13 = arith.addf %10, %12 : vector<8x128xf32>
    %14 = arith.addf %0, %13 : vector<8x128xf32>
    %cst_11 = arith.constant 2.000000e-01 : f32
    %15 = vector.broadcast %cst_11 : f32 to vector<8x128xf32>
    %16 = arith.mulf %15, %14 : vector<8x128xf32>
    %17 = arith.maximumf %14, %16 : vector<8x128xf32>
    %c0_12 = arith.constant 0 : index
    %c0_13 = arith.constant 0 : index
    %18 = vector.load %arg6[%c0_12, %c0_13] : memref<8x128xf32, #tpu.memory_space<vmem>>, vector<8x128xf32>
    tpu.vector_store %arg6[%c0_12, %c0_13], %17 {strides = array<i32>} : memref<8x128xf32, #tpu.memory_space<vmem>>, vector<8x128xf32>,
    return
  }
  func.func @transform_0(%arg0: i32) -> (i32, i32) {
    %c0_i32 = arith.constant 0 : i32
    %c0_i32_0 = arith.constant 0 : i32
    return %arg0, %c0_i32 : i32, i32
  }
  func.func @transform_1(%arg0: i32) -> (i32, i32) {
    %c0_i32 = arith.constant 0 : i32
    %c0_i32_0 = arith.constant 0 : i32
    %c0_i32_1 = arith.constant 0 : i32
    return %c0_i32, %c0_i32_0 : i32, i32
  }
  func.func @transform_2(%arg0: i32) -> (i32, i32) {
    %c0_i32 = arith.constant 0 : i32
    %c0_i32_0 = arith.constant 0 : i32
    %c0_i32_1 = arith.constant 0 : i32
    return %c0_i32, %c0_i32_0 : i32, i32
  }
  func.func @transform_3(%arg0: i32) -> (i32, i32) {
    %c0_i32 = arith.constant 0 : i32
    %c0_i32_0 = arith.constant 0 : i32
    %c0_i32_1 = arith.constant 0 : i32
    return %c0_i32, %c0_i32_0 : i32, i32
  }
  func.func @transform_4(%arg0: i32) -> (i32, i32) {
    %c0_i32 = arith.constant 0 : i32
    %c0_i32_0 = arith.constant 0 : i32
    %c0_i32_1 = arith.constant 0 : i32
    return %c0_i32, %c0_i32_0 : i32, i32
  }
  func.func @transform_5(%arg0: i32) -> (i32, i32) {
    %c0_i32 = arith.constant 0 : i32
    %c0_i32_0 = arith.constant 0 : i32
    return %arg0, %c0_i32 : i32, i32
  }
}

</mosaic_0001>

<bundles_post_ra>
// kernel: residual_block.1
= control target key start
LH: loop header
LB: loop body
LE: loop exit
PB: predicated region body
PF: predicated region fallthrough
CT: control target
= control target key end

     0   :  { %10 = vsyncpa [#allocation3], 0  ;;  %s961_s0 = inlined_call_operand.vmem [shape: f32[16,128], index: 0, kind: input, shape index: {}]   ;;  %s962_s1 = inlined_call_operand.vmem [shape: f32[128,128], index: 1, kind: input, shape index: {}]   ;;  %s963_s2 = inlined_call_operand.vmem [shape: f32[1,128], index: 2, kind: input, shape index: {}]   ;;  %s964_s3 = inlined_call_operand.vmem [shape: f32[128,128], index: 3, kind: input, shape index: {}]   ;;  %s965_s4 = inlined_call_operand.vmem [shape: f32[1,128], index: 4, kind: input, shape index: {}]   ;;  %s966_s5 = inlined_call_operand.hbm [shape: f32[16,128], index: 5, kind: output, shape index: {}]  }
   0x1   :  { %12 = vsyncpa [#allocation3 + $0x1], 0  ;;  %s738_s18 = smov 0   ;;  %s740_s19 = smov 0  }
   0x2   :  { %s742_s20 = smov 0   ;;  %s744_s21 = smov 0  }
   0x3 LB: > { %s759_s22 = sadd.s32 4294967295, %s703_s21   ;;  %s486_s23 = sadd.s32 4294967294, %s703_s21   ;;  %s703_s21 = sphi %s744_s21, %s972_s21   ;;  %s699_s20 = sphi %s742_s20, %s971_s20   ;;  %s695_s19 = sphi %s740_s19, %s970_s19   ;;  %s691_s18 = sphi %s738_s18, %s969_s18  }
   0x4   : > { %s763_s24 = sadd.s32 1, %s703_s21   ;;  %s135_s25 = sadd.s32 1, %s699_s20 }
   0x5   : > { %s132_s26 = ssub.s32 %s703_s21, %s763_s24  ;;  %p145_p0 = scmp.ne.s32.totalorder %s699_s20, %s695_s19 }
   0x6   : > { %p133_p1 = scmp.eq.s32.totalorder %s132_s26, 0  ;;  %p146_p2 = scmp.eq.s32.totalorder %s759_s22, 1 }
   0x7   : > { %p151_p3 = scmp.ne.s32.totalorder %s695_s19, %s691_s18  ;;  %p152_p4 = scmp.eq.s32.totalorder %s486_s23, 1 }
   0x8   : > { %s774_s27 = scalar_select %p133_p1, %s699_s20, %s135_s25  }
   0x9   : > { %p776_p5 = por %p146_p2, %p145_p0  ;;  %p780_p6 = por %p152_p4, %p151_p3 }
   0xa   : > { %p489_p7 = scmp.ge.s32.totalorder %s703_s21, 1  ;;  %p189_p8 = scmp.lt.s32.totalorder %s703_s21, 3 }
   0xc   : > { %p190_p9 = pnand %p489_p7, %p189_p8 }
   0xd   : > { %p216_p10 = scmp.lt.s32.totalorder (!%p190_p9), %s759_s22, 1  ;;  %s213_s12 = sand.u32 (!%p190_p9), 1, %s695_s19  }
   0xe   : > { %193 = sbr.rel (%p190_p9) target bundleno = 465 (0x1d1), region = 40  ;;  %s495_s16 = sshll.u32 (!%p190_p9), %s759_s22, 7 }
   0xf   : > { %s425_s30 = scalar_lea.hbm (!%p190_p9), %s966_s5, %s495_s16  ;;  %s707_s8 = smov (!%p190_p9), [#allocation2]  }
  0x10   : > { %s647_s9 = sshll.u32 (!%p190_p9), %s707_s8, 4  ;;  %s648_s9 = int_to_ptr.vmem [resolvable:$false] %s647_s9 }
  0x13   : > { %v236_v0 = vld [vmem:[%s962_s1 + $0x78] sm:$0xff]  ;;  %v705_v1 = vmov 0.0   ;;  %v235_v2 = vld [vmem:[%s962_s1 + $0x70] sm:$0xff]  ;;  %vm706_vm0 = vmmov 0   ;;  %v234_v3 = vld [vmem:[%s962_s1 + $0x68] sm:$0xff]  ;;  %s217_s13 = scalar_select %p216_p10, %s759_s22, 1 }
  0x14   : > { %532 = vmatprep.subr.mxu0 %v705_v1  ;;  %564 = vmatprep.mubr.msk.f32.mxu0 %vm706_vm0, %v705_v1  ;;  %v233_v4 = vld [vmem:[%s962_s1 + $0x60] sm:$0xff]  ;;  %v331_v5 = vld [vmem:[%s964_s3 + $0x78] sm:$0xff]  ;;  %v330_v6 = vld [vmem:[%s964_s3 + $0x70] sm:$0xff]  ;;  %s649_s22 = scalar_lea.vmem %s648_s9, 256 }
  0x15   : > { %533 = vmatpush3.msra.mxu0 %v236_v0  ;;  %567 = vmatprep.subr.mxu1 %v705_v1  ;;  %v232_v7 = vld [vmem:[%s962_s1 + $0x58] sm:$0xff]  ;;  %v329_v8 = vld [vmem:[%s964_s3 + $0x68] sm:$0xff]  ;;  %v231_v9 = vld [vmem:[%s962_s1 + $0x50] sm:$0xff]  ;;  %s491_s6 = sshll.u32 %s217_s13, 3 }
  0x16   : > { %534 = vmatprep.subr.mxu0 %v705_v1  ;;  %599 = vmatprep.mubr.msk.f32.mxu1 %vm706_vm0, %v705_v1  ;;  %v328_v10 = vld [vmem:[%s964_s3 + $0x60] sm:$0xff]  ;;  %v230_v11 = vld [vmem:[%s962_s1 + $0x48] sm:$0xff]  ;;  %v327_v12 = vld [vmem:[%s964_s3 + $0x58] sm:$0xff]  ;;  %s219_s15 = scalar_lea.vmem %s961_s0, %s491_s6  ;;  %s414_s6 = scalar_lea.sflag [#allocation3], %s213_s12 }
  0x17   : > { %535 = vmatpush3.msra.mxu0 %v235_v2  ;;  %568 = vmatpush3.msra.mxu1 %v331_v5  ;;  %v229_v13 = vld [vmem:[%s962_s1 + $0x40] sm:$0xff]  ;;  %v326_v14 = vld [vmem:[%s964_s3 + $0x50] sm:$0xff]  ;;  %v228_v15 = vld [vmem:[%s962_s1 + $0x38] sm:$0xff] }
  0x18   : > { %536 = vmatprep.subr.mxu0 %v705_v1  ;;  %569 = vmatprep.subr.mxu1 %v705_v1  ;;  %v325_v16 = vld [vmem:[%s964_s3 + $0x48] sm:$0xff]  ;;  %v227_v17 = vld [vmem:[%s962_s1 + $0x30] sm:$0xff]  ;;  %v324_v18 = vld [vmem:[%s964_s3 + $0x40] sm:$0xff] }
  0x19   : > { %537 = vmatpush3.msra.mxu0 %v234_v3  ;;  %570 = vmatpush3.msra.mxu1 %v330_v6  ;;  %v226_v19 = vld [vmem:[%s962_s1 + $0x28] sm:$0xff]  ;;  %v323_v20 = vld [vmem:[%s964_s3 + $0x38] sm:$0xff]  ;;  %v225_v21 = vld [vmem:[%s962_s1 + $0x20] sm:$0xff] }
  0x1a   : > { %538 = vmatprep.subr.mxu0 %v705_v1  ;;  %571 = vmatprep.subr.mxu1 %v705_v1  ;;  %v322_v22 = vld [vmem:[%s964_s3 + $0x30] sm:$0xff]  ;;  %v224_v23 = vld [vmem:[%s962_s1 + $0x18] sm:$0xff]  ;;  %v321_v24 = vld [vmem:[%s964_s3 + $0x28] sm:$0xff] }
  0x1b   : > { %539 = vmatpush3.msra.mxu0 %v233_v4  ;;  %572 = vmatpush3.msra.mxu1 %v329_v8  ;;  %v223_v25 = vld [vmem:[%s962_s1 + $0x10] sm:$0xff]  ;;  %v320_v26 = vld [vmem:[%s964_s3 + $0x20] sm:$0xff]  ;;  %v222_v27 = vld [vmem:[%s962_s1 + $0x8] sm:$0xff] }
  0x1c   : > { %540 = vmatprep.subr.mxu0 %v705_v1  ;;  %573 = vmatprep.subr.mxu1 %v705_v1  ;;  %v221_v28 = vld [vmem:[%s962_s1] sm:$0xff]  ;;  %v319_v30 = vld [vmem:[%s964_s3 + $0x18] sm:$0xff]  ;;  %v318_v31 = vld [vmem:[%s964_s3 + $0x10] sm:$0xff] }
  0x1d   : > { %541 = vmatpush3.msra.mxu0 %v232_v7  ;;  %574 = vmatpush3.msra.mxu1 %v328_v10  ;;  %v220_v29 = vld [vmem:[%s219_s15] sm:$0xff]  ;;  %v317_v32 = vld [vmem:[%s964_s3 + $0x8] sm:$0xff]  ;;  %s490_s15 = sshll.u32 %s213_s12, 3 }
  0x1e   : > { %542 = vmatprep.subr.mxu0 %v705_v1  ;;  %575 = vmatprep.subr.mxu1 %v705_v1  ;;  %v316_v33 = vld [vmem:[%s964_s3] sm:$0xff]  ;;  %s215_s17 = scalar_lea.vmem [#allocation2], %s490_s15 }
  0x1f   : > { %543 = vmatpush3.msra.mxu0 %v231_v9  ;;  %576 = vmatpush3.msra.mxu1 %v327_v12  ;;  %v492_v34 = vld [vmem:[%s963_s2] ss:$0 sm:$0xff]  ;;  %s427_s23 = sshll.u32 %s215_s17, 4  ;;  %s428_s23 = int_to_ptr.vmem [resolvable:$true] %s427_s23 }
  0x20   : > { %544 = vmatprep.subr.mxu0 %v705_v1  ;;  %577 = vmatprep.subr.mxu1 %v705_v1  ;;  %v493_v40 = vld [vmem:[%s965_s4] ss:$0 sm:$0xff]  ;;  %s643_s7 = scalar_lea.vmem %s428_s23, 128  ;;  %p650_p0 = scmp.lt.s32.totalorder %s428_s23, %s648_s9 }
  0x21   : > { %545 = vmatpush3.msra.mxu0 %v230_v11  ;;  %578 = vmatpush3.msra.mxu1 %v326_v14  ;;  %p644_p11 = scmp.ne.s32.totalorder %s428_s23, %s643_s7  ;;  %p651_p1 = scmp.lt.s32.totalorder %s649_s22, %s643_s7 }
  0x22   : > { %546 = vmatprep.subr.mxu0 %v705_v1  ;;  %579 = vmatprep.subr.mxu1 %v705_v1 }
  0x23   : > { %547 = vmatpush3.msra.mxu0 %v229_v13  ;;  %580 = vmatpush3.msra.mxu1 %v325_v16  ;;  %p645_p12 = pnand %p644_p11, %p776_p5  ;;  %p652_p2 = por %p651_p1, %p650_p0 }
  0x24   : > { %548 = vmatprep.subr.mxu0 %v705_v1  ;;  %581 = vmatprep.subr.mxu1 %v705_v1 }
  0x25   : > { %549 = vmatpush3.msra.mxu0 %v228_v15  ;;  %582 = vmatpush3.msra.mxu1 %v324_v18  ;;  %p646_p13 = pneg %p645_p12 }
  0x26   : > { %550 = vmatprep.subr.mxu0 %v705_v1  ;;  %583 = vmatprep.subr.mxu1 %v705_v1 }
  0x27   : > { %551 = vmatpush3.msra.mxu0 %v227_v17  ;;  %584 = vmatpush3.msra.mxu1 %v323_v20  ;;  %p653_p3 = pnand %p652_p2, %p646_p13 }
  0x28   : > { %552 = vmatprep.subr.mxu0 %v705_v1  ;;  %585 = vmatprep.subr.mxu1 %v705_v1 }
  0x29   : > { %553 = vmatpush3.msra.mxu0 %v226_v19  ;;  %586 = vmatpush3.msra.mxu1 %v322_v22 }
  0x2a   : > { %554 = vmatprep.subr.mxu0 %v705_v1  ;;  %587 = vmatprep.subr.mxu1 %v705_v1 }
  0x2b   : > { %555 = vmatpush3.msra.mxu0 %v225_v21  ;;  %588 = vmatpush3.msra.mxu1 %v321_v24 }
  0x2c   : > { %556 = vmatprep.subr.mxu0 %v705_v1  ;;  %589 = vmatprep.subr.mxu1 %v705_v1 }
  0x2d   : > { %557 = vmatpush3.msra.mxu0 %v224_v23  ;;  %590 = vmatpush3.msra.mxu1 %v320_v26 }
  0x2e   : > { %558 = vmatprep.subr.mxu0 %v705_v1  ;;  %591 = vmatprep.subr.mxu1 %v705_v1 }
  0x2f   : > { %559 = vmatpush3.msra.mxu0 %v223_v25  ;;  %592 = vmatpush3.msra.mxu1 %v319_v30 }
  0x30   : > { %560 = vmatprep.subr.mxu0 %v705_v1  ;;  %593 = vmatprep.subr.mxu1 %v705_v1 }
  0x31   : > { %561 = vmatpush3.msra.mxu0 %v222_v27  ;;  %594 = vmatpush3.msra.mxu1 %v318_v31 }
  0x32   : > { %562 = vmatprep.subr.mxu0 %v705_v1  ;;  %595 = vmatprep.subr.mxu1 %v705_v1 }
  0x33   : > { %563 = vmatpush3.msra.mxu0 %v221_v28  ;;  %596 = vmatpush3.msra.mxu1 %v317_v32 }
  0x34   : > { %565 = vmatmul.mubr.f32.vlgmr.msra.gmra.mxu0 %v220_v29  ;;  %597 = vmatprep.subr.mxu1 %v705_v1 }
  0x35   : > { %598 = vmatpush3.msra.mxu1 %v316_v33 }
  0xf4   : > { %v310_v35 = vpop.f32.mrf.mxu0 }
  0xf5   : > { %v311_v36 = vadd.f32 %v492_v34, %v310_v35 }
  0xf6   : > { %v566_v37 = vpop.f32.mrf.mxu0 }
  0xf7   : > { %v314_v38 = vmul.f32 0.2, %v311_v36 }
  0xf9   : > { %v315_v39 = vmax.f32 %v311_v36, %v314_v38 }
  0xfb   : > { %600 = vmatmul.mubr.f32.vlgmr.msra.gmra.mxu1 %v315_v39 }
 0x1bb   : > { %v405_v41 = vpop.f32.mrf.mxu1 }
 0x1bc   : > { %v406_v42 = vadd.f32 %v493_v40, %v405_v41 }
 0x1bd   : > { %v601_v43 = vpop.f32.mrf.mxu1 }
 0x1be   : > { %v409_v44 = vadd.f32 %v406_v42, %v220_v29 }
 0x1c0   : > { %v410_v45 = vmul.f32 0.2, %v409_v44 }
 0x1c2   : > { %v411_v46 = vmax.f32 %v409_v44, %v410_v45 }
 0x1c4   : > { %412 = vst [vmem:[%s215_s17] sm:$0xff] %v411_v46 }
 0x1c5   : > { %656 = shalt.err (!%p653_p3)
}
 0x1c6   : > { %s657_s10 = scalar_lea.hbm %s425_s30, 128  ;;  %s661_s13 = scalar_lea.hbm %s966_s5, 256 }
 0x1c7   : > { %p658_p4 = scmp.ne.s32.totalorder %s425_s30, %s657_s10  ;;  %p662_p9 = scmp.lt.s32.totalorder %s425_s30, %s966_s5 }
 0x1c8   : > { %p663_p10 = scmp.lt.s32.totalorder %s661_s13, %s657_s10 }
 0x1c9   : > { %p659_p7 = pnand %p658_p4, %p776_p5 }
 0x1ca   : > { %p664_p11 = por %p663_p10, %p662_p9 }
 0x1cb   : > { %p660_p8 = pneg %p659_p7 }
 0x1cd   : > { %p665_p12 = pnand %p664_p11, %p660_p8 }
 0x1cf   : > { %668 = shalt.err (!%p665_p12)
}
 0x1d0   : > { %602 = dma.vmem_to_hbm [thread:$0]  (%p776_p5), %s428_s23, 128, %s425_s30, %s414_s6  }
 0x1d1 PF: > { %p608_p13 = scmp.ge.s32.totalorder %s703_s21, 2  ;;  %s439_s16 = sand.u32 1, %s691_s18  }
 0x1d2   : > { %s440_s17 = scalar_lea.sflag [#allocation3], %s439_s16 }
 0x1d3   : > { %p605_p0 = pnand %p608_p13, %p780_p6 }
 0x1d5   : > { %p606_p1 = pneg %p605_p0 }
 0x1d7   : > { %686 = dma.done.wait (%p606_p1), %s440_s17, 128  }
 0x1d8   : > { %688 = vsyncadd (%p606_p1), %s440_s17, 4294967168  ;;  %p15_p2 = scmp.ge.s32.totalorder %s763_s24, 4   ;;  %s969_s18 = smov %s695_s19 }
 0x1d9   : > { %s970_s19 = smov %s699_s20  ;;  %s971_s20 = smov %s774_s27 }
 0x1da   : > { %s972_s21 = smov %s763_s24  ;;  %17 = sbr.rel (!%p15_p2) target bundleno = 3 (0x3), region = 75 }
 0x1df   :  { %445 = vsyncpa [#allocation3], 1 }
 0x1e0   :  { %447 = vsyncpa [#allocation3 + $0x1], 1 }

// kernel: residual_block.1
= control target key start
LH: loop header
LB: loop body
LE: loop exit
PB: predicated region body
PF: predicated region fallthrough
CT: control target
= control target key end

     0   :  { %10 = vsyncpa [#allocation3], 0  ;;  %s961_s0 = inlined_call_operand.vmem [shape: f32[16,128], index: 0, kind: input, shape index: {}]   ;;  %s962_s1 = inlined_call_operand.vmem [shape: f32[128,128], index: 1, kind: input, shape index: {}]   ;;  %s963_s2 = inlined_call_operand.vmem [shape: f32[1,128], index: 2, kind: input, shape index: {}]   ;;  %s964_s3 = inlined_call_operand.vmem [shape: f32[128,128], index: 3, kind: input, shape index: {}]   ;;  %s965_s4 = inlined_call_operand.vmem [shape: f32[1,128], index: 4, kind: input, shape index: {}]   ;;  %s966_s5 = inlined_call_operand.hbm [shape: f32[16,128], index: 5, kind: output, shape index: {}]  }
   0x1   :  { %12 = vsyncpa [#allocation3 + $0x1], 0  ;;  %s738_s18 = smov 0   ;;  %s740_s19 = smov 0  }
   0x2   :  { %s742_s20 = smov 0   ;;  %s744_s21 = smov 0  }
   0x3 LB: > { %s759_s22 = sadd.s32 4294967295, %s703_s21   ;;  %s486_s23 = sadd.s32 4294967294, %s703_s21   ;;  %s703_s21 = sphi %s744_s21, %s972_s21   ;;  %s699_s20 = sphi %s742_s20, %s971_s20   ;;  %s695_s19 = sphi %s740_s19, %s970_s19   ;;  %s691_s18 = sphi %s738_s18, %s969_s18  }
   0x4   : > { %s763_s24 = sadd.s32 1, %s703_s21   ;;  %s135_s25 = sadd.s32 1, %s699_s20 }
   0x5   : > { %s132_s26 = ssub.s32 %s703_s21, %s763_s24  ;;  %p145_p0 = scmp.ne.s32.totalorder %s699_s20, %s695_s19 }
   0x6   : > { %p133_p1 = scmp.eq.s32.totalorder %s132_s26, 0  ;;  %p146_p2 = scmp.eq.s32.totalorder %s759_s22, 1 }
   0x7   : > { %p151_p3 = scmp.ne.s32.totalorder %s695_s19, %s691_s18  ;;  %p152_p4 = scmp.eq.s32.totalorder %s486_s23, 1 }
   0x8   : > { %s774_s27 = scalar_select %p133_p1, %s699_s20, %s135_s25  }
   0x9   : > { %p776_p5 = por %p146_p2, %p145_p0  ;;  %p780_p6 = por %p152_p4, %p151_p3 }
   0xa   : > { %p489_p7 = scmp.ge.s32.totalorder %s703_s21, 1  ;;  %p189_p8 = scmp.lt.s32.totalorder %s703_s21, 3 }
   0xc   : > { %p190_p9 = pnand %p489_p7, %p189_p8 }
   0xd   : > { %p216_p10 = scmp.lt.s32.totalorder (!%p190_p9), %s759_s22, 1  ;;  %s213_s12 = sand.u32 (!%p190_p9), 1, %s695_s19  }
   0xe   : > { %193 = sbr.rel (%p190_p9) target bundleno = 465 (0x1d1), region = 40  ;;  %s495_s16 = sshll.u32 (!%p190_p9), %s759_s22, 7 }
   0xf   : > { %s425_s30 = scalar_lea.hbm (!%p190_p9), %s966_s5, %s495_s16  ;;  %s707_s8 = smov (!%p190_p9), [#allocation2]  }
  0x10   : > { %s647_s9 = sshll.u32 (!%p190_p9), %s707_s8, 4  ;;  %s648_s9 = int_to_ptr.vmem [resolvable:$false] %s647_s9 }
  0x13   : > { %v236_v0 = vld [vmem:[%s962_s1 + $0x78] sm:$0xff]  ;;  %v705_v1 = vmov 0.0   ;;  %v235_v2 = vld [vmem:[%s962_s1 + $0x70] sm:$0xff]  ;;  %vm706_vm0 = vmmov 0   ;;  %v234_v3 = vld [vmem:[%s962_s1 + $0x68] sm:$0xff]  ;;  %s217_s13 = scalar_select %p216_p10, %s759_s22, 1 }
  0x14   : > { %532 = vmatprep.subr.mxu0 %v705_v1  ;;  %564 = vmatprep.mubr.msk.f32.mxu0 %vm706_vm0, %v705_v1  ;;  %v233_v4 = vld [vmem:[%s962_s1 + $0x60] sm:$0xff]  ;;  %v331_v5 = vld [vmem:[%s964_s3 + $0x78] sm:$0xff]  ;;  %v330_v6 = vld [vmem:[%s964_s3 + $0x70] sm:$0xff]  ;;  %s649_s22 = scalar_lea.vmem %s648_s9, 256 }
  0x15   : > { %533 = vmatpush3.msra.mxu0 %v236_v0  ;;  %567 = vmatprep.subr.mxu1 %v705_v1  ;;  %v232_v7 = vld [vmem:[%s962_s1 + $0x58] sm:$0xff]  ;;  %v329_v8 = vld [vmem:[%s964_s3 + $0x68] sm:$0xff]  ;;  %v231_v9 = vld [vmem:[%s962_s1 + $0x50] sm:$0xff]  ;;  %s491_s6 = sshll.u32 %s217_s13, 3 }
  0x16   : > { %534 = vmatprep.subr.mxu0 %v705_v1  ;;  %599 = vmatprep.mubr.msk.f32.mxu1 %vm706_vm0, %v705_v1  ;;  %v328_v10 = vld [vmem:[%s964_s3 + $0x60] sm:$0xff]  ;;  %v230_v11 = vld [vmem:[%s962_s1 + $0x48] sm:$0xff]  ;;  %v327_v12 = vld [vmem:[%s964_s3 + $0x58] sm:$0xff]  ;;  %s219_s15 = scalar_lea.vmem %s961_s0, %s491_s6  ;;  %s414_s6 = scalar_lea.sflag [#allocation3], %s213_s12 }
  0x17   : > { %535 = vmatpush3.msra.mxu0 %v235_v2  ;;  %568 = vmatpush3.msra.mxu1 %v331_v5  ;;  %v229_v13 = vld [vmem:[%s962_s1 + $0x40] sm:$0xff]  ;;  %v326_v14 = vld [vmem:[%s964_s3 + $0x50] sm:$0xff]  ;;  %v228_v15 = vld [vmem:[%s962_s1 + $0x38] sm:$0xff] }
  0x18   : > { %536 = vmatprep.subr.mxu0 %v705_v1  ;;  %569 = vmatprep.subr.mxu1 %v705_v1  ;;  %v325_v16 = vld [vmem:[%s964_s3 + $0x48] sm:$0xff]  ;;  %v227_v17 = vld [vmem:[%s962_s1 + $0x30] sm:$0xff]  ;;  %v324_v18 = vld [vmem:[%s964_s3 + $0x40] sm:$0xff] }
  0x19   : > { %537 = vmatpush3.msra.mxu0 %v234_v3  ;;  %570 = vmatpush3.msra.mxu1 %v330_v6  ;;  %v226_v19 = vld [vmem:[%s962_s1 + $0x28] sm:$0xff]  ;;  %v323_v20 = vld [vmem:[%s964_s3 + $0x38] sm:$0xff]  ;;  %v225_v21 = vld [vmem:[%s962_s1 + $0x20] sm:$0xff] }
  0x1a   : > { %538 = vmatprep.subr.mxu0 %v705_v1  ;;  %571 = vmatprep.subr.mxu1 %v705_v1  ;;  %v322_v22 = vld [vmem:[%s964_s3 + $0x30] sm:$0xff]  ;;  %v224_v23 = vld [vmem:[%s962_s1 + $0x18] sm:$0xff]  ;;  %v321_v24 = vld [vmem:[%s964_s3 + $0x28] sm:$0xff] }
  0x1b   : > { %539 = vmatpush3.msra.mxu0 %v233_v4  ;;  %572 = vmatpush3.msra.mxu1 %v329_v8  ;;  %v223_v25 = vld [vmem:[%s962_s1 + $0x10] sm:$0xff]  ;;  %v320_v26 = vld [vmem:[%s964_s3 + $0x20] sm:$0xff]  ;;  %v222_v27 = vld [vmem:[%s962_s1 + $0x8] sm:$0xff] }
  0x1c   : > { %540 = vmatprep.subr.mxu0 %v705_v1  ;;  %573 = vmatprep.subr.mxu1 %v705_v1  ;;  %v221_v28 = vld [vmem:[%s962_s1] sm:$0xff]  ;;  %v319_v30 = vld [vmem:[%s964_s3 + $0x18] sm:$0xff]  ;;  %v318_v31 = vld [vmem:[%s964_s3 + $0x10] sm:$0xff] }
  0x1d   : > { %541 = vmatpush3.msra.mxu0 %v232_v7  ;;  %574 = vmatpush3.msra.mxu1 %v328_v10  ;;  %v220_v29 = vld [vmem:[%s219_s15] sm:$0xff]  ;;  %v317_v32 = vld [vmem:[%s964_s3 + $0x8] sm:$0xff]  ;;  %s490_s15 = sshll.u32 %s213_s12, 3 }
  0x1e   : > { %542 = vmatprep.subr.mxu0 %v705_v1  ;;  %575 = vmatprep.subr.mxu1 %v705_v1  ;;  %v316_v33 = vld [vmem:[%s964_s3] sm:$0xff]  ;;  %s215_s17 = scalar_lea.vmem [#allocation2], %s490_s15 }
  0x1f   : > { %543 = vmatpush3.msra.mxu0 %v231_v9  ;;  %576 = vmatpush3.msra.mxu1 %v327_v12  ;;  %v492_v34 = vld [vmem:[%s963_s2] ss:$0 sm:$0xff]  ;;  %s427_s23 = sshll.u32 %s215_s17, 4  ;;  %s428_s23 = int_to_ptr.vmem [resolvable:$true] %s427_s23 }
  0x20   : > { %544 = vmatprep.subr.mxu0 %v705_v1  ;;  %577 = vmatprep.subr.mxu1 %v705_v1  ;;  %v493_v40 = vld [vmem:[%s965_s4] ss:$0 sm:$0xff]  ;;  %s643_s7 = scalar_lea.vmem %s428_s23, 128  ;;  %p650_p0 = scmp.lt.s32.totalorder %s428_s23, %s648_s9 }
  0x21   : > { %545 = vmatpush3.msra.mxu0 %v230_v11  ;;  %578 = vmatpush3.msra.mxu1 %v326_v14  ;;  %p644_p11 = scmp.ne.s32.totalorder %s428_s23, %s643_s7  ;;  %p651_p1 = scmp.lt.s32.totalorder %s649_s22, %s643_s7 }
  0x22   : > { %546 = vmatprep.subr.mxu0 %v705_v1  ;;  %579 = vmatprep.subr.mxu1 %v705_v1 }
  0x23   : > { %547 = vmatpush3.msra.mxu0 %v229_v13  ;;  %580 = vmatpush3.msra.mxu1 %v325_v16  ;;  %p645_p12 = pnand %p644_p11, %p776_p5  ;;  %p652_p2 = por %p651_p1, %p650_p0 }
  0x24   : > { %548 = vmatprep.subr.mxu0 %v705_v1  ;;  %581 = vmatprep.subr.mxu1 %v705_v1 }
  0x25   : > { %549 = vmatpush3.msra.mxu0 %v228_v15  ;;  %582 = vmatpush3.msra.mxu1 %v324_v18  ;;  %p646_p13 = pneg %p645_p12 }
  0x26   : > { %550 = vmatprep.subr.mxu0 %v705_v1  ;;  %583 = vmatprep.subr.mxu1 %v705_v1 }
  0x27   : > { %551 = vmatpush3.msra.mxu0 %v227_v17  ;;  %584 = vmatpush3.msra.mxu1 %v323_v20  ;;  %p653_p3 = pnand %p652_p2, %p646_p13 }
  0x28   : > { %552 = vmatprep.subr.mxu0 %v705_v1  ;;  %585 = vmatprep.subr.mxu1 %v705_v1 }
  0x29   : > { %553 = vmatpush3.msra.mxu0 %v226_v19  ;;  %586 = vmatpush3.msra.mxu1 %v322_v22 }
  0x2a   : > { %554 = vmatprep.subr.mxu0 %v705_v1  ;;  %587 = vmatprep.subr.mxu1 %v705_v1 }
  0x2b   : > { %555 = vmatpush3.msra.mxu0 %v225_v21  ;;  %588 = vmatpush3.msra.mxu1 %v321_v24 }
  0x2c   : > { %556 = vmatprep.subr.mxu0 %v705_v1  ;;  %589 = vmatprep.subr.mxu1 %v705_v1 }
  0x2d   : > { %557 = vmatpush3.msra.mxu0 %v224_v23  ;;  %590 = vmatpush3.msra.mxu1 %v320_v26 }
  0x2e   : > { %558 = vmatprep.subr.mxu0 %v705_v1  ;;  %591 = vmatprep.subr.mxu1 %v705_v1 }
  0x2f   : > { %559 = vmatpush3.msra.mxu0 %v223_v25  ;;  %592 = vmatpush3.msra.mxu1 %v319_v30 }
  0x30   : > { %560 = vmatprep.subr.mxu0 %v705_v1  ;;  %593 = vmatprep.subr.mxu1 %v705_v1 }
  0x31   : > { %561 = vmatpush3.msra.mxu0 %v222_v27  ;;  %594 = vmatpush3.msra.mxu1 %v318_v31 }
  0x32   : > { %562 = vmatprep.subr.mxu0 %v705_v1  ;;  %595 = vmatprep.subr.mxu1 %v705_v1 }
  0x33   : > { %563 = vmatpush3.msra.mxu0 %v221_v28  ;;  %596 = vmatpush3.msra.mxu1 %v317_v32 }
  0x34   : > { %565 = vmatmul.mubr.f32.vlgmr.msra.gmra.mxu0 %v220_v29  ;;  %597 = vmatprep.subr.mxu1 %v705_v1 }
  0x35   : > { %598 = vmatpush3.msra.mxu1 %v316_v33 }
  0xf4   : > { %v310_v35 = vpop.f32.mrf.mxu0 }
  0xf5   : > { %v311_v36 = vadd.f32 %v492_v34, %v310_v35 }
  0xf6   : > { %v566_v37 = vpop.f32.mrf.mxu0 }
  0xf7   : > { %v314_v38 = vmul.f32 0.2, %v311_v36 }
  0xf9   : > { %v315_v39 = vmax.f32 %v311_v36, %v314_v38 }
  0xfb   : > { %600 = vmatmul.mubr.f32.vlgmr.msra.gmra.mxu1 %v315_v39 }
 0x1bb   : > { %v405_v41 = vpop.f32.mrf.mxu1 }
 0x1bc   : > { %v406_v42 = vadd.f32 %v493_v40, %v405_v41 }
 0x1bd   : > { %v601_v43 = vpop.f32.mrf.mxu1 }
 0x1be   : > { %v409_v44 = vadd.f32 %v406_v42, %v220_v29 }
 0x1c0   : > { %v410_v45 = vmul.f32 0.2, %v409_v44 }
 0x1c2   : > { %v411_v46 = vmax.f32 %v409_v44, %v410_v45 }
 0x1c4   : > { %412 = vst [vmem:[%s215_s17] sm:$0xff] %v411_v46 }
 0x1c5   : > { %656 = shalt.err (!%p653_p3)
}
 0x1c6   : > { %s657_s10 = scalar_lea.hbm %s425_s30, 128  ;;  %s661_s13 = scalar_lea.hbm %s966_s5, 256 }
 0x1c7   : > { %p658_p4 = scmp.ne.s32.totalorder %s425_s30, %s657_s10  ;;  %p662_p9 = scmp.lt.s32.totalorder %s425_s30, %s966_s5 }
 0x1c8   : > { %p663_p10 = scmp.lt.s32.totalorder %s661_s13, %s657_s10 }
 0x1c9   : > { %p659_p7 = pnand %p658_p4, %p776_p5 }
 0x1ca   : > { %p664_p11 = por %p663_p10, %p662_p9 }
 0x1cb   : > { %p660_p8 = pneg %p659_p7 }
 0x1cd   : > { %p665_p12 = pnand %p664_p11, %p660_p8 }
 0x1cf   : > { %668 = shalt.err (!%p665_p12)
}
 0x1d0   : > { %602 = dma.vmem_to_hbm [thread:$0]  (%p776_p5), %s428_s23, 128, %s425_s30, %s414_s6  }
 0x1d1 PF: > { %p608_p13 = scmp.ge.s32.totalorder %s703_s21, 2  ;;  %s439_s16 = sand.u32 1, %s691_s18  }
 0x1d2   : > { %s440_s17 = scalar_lea.sflag [#allocation3], %s439_s16 }
 0x1d3   : > { %p605_p0 = pnand %p608_p13, %p780_p6 }
 0x1d5   : > { %p606_p1 = pneg %p605_p0 }
 0x1d7   : > { %686 = dma.done.wait (%p606_p1), %s440_s17, 128  }
 0x1d8   : > { %688 = vsyncadd (%p606_p1), %s440_s17, 4294967168  ;;  %p15_p2 = scmp.ge.s32.totalorder %s763_s24, 4   ;;  %s969_s18 = smov %s695_s19 }
 0x1d9   : > { %s970_s19 = smov %s699_s20  ;;  %s971_s20 = smov %s774_s27 }
 0x1da   : > { %s972_s21 = smov %s763_s24  ;;  %17 = sbr.rel (!%p15_p2) target bundleno = 3 (0x3), region = 75 }
 0x1df   :  { %445 = vsyncpa [#allocation3], 1 }
 0x1e0   :  { %447 = vsyncpa [#allocation3 + $0x1], 1 }

</bundles_post_ra>
